<compile_context>
chip_gen: v6e
topology: v6e:2x2x1
jax: 0.10.0
libtpu: 0.0.40
codegen_flags: <defaults>
</compile_context>

<pallas_src>
import functools
import math

import jax
import jax.numpy as jnp
from jax import lax
from jax.experimental import pallas as pl
from jax.experimental.pallas import tpu as pltpu


def _self_attention_kernel(x_ref, wq_ref, bq_ref, wk_ref, bk_ref, o_ref, *, scale):
    # x_ref : (Bt, S, Hp)  block of the (lane-padded) input, original dtype
    # wq/wk : (Hp, Hp)     PyTorch layout [out, in] (grid-invariant)
    # bq/bk : (1, Hp)
    # o_ref : (Bt, S, Hp)
    bt, s, hp = x_ref.shape

    x = x_ref[...]                              # keep input dtype (no upcast)
    x2 = x.reshape(bt * s, hp)                  # leading-dim merge (layout-free)

    wq = wq_ref[...]
    wk = wk_ref[...]
    bq = bq_ref[...].astype(jnp.float32)
    bk = bk_ref[...].astype(jnp.float32)

    # y = x @ W^T + b without materializing W^T: contract x's H with W's in-dim.
    dn = (((1,), (1,)), ((), ()))
    q = lax.dot_general(x2, wq, dn, preferred_element_type=jnp.float32) + bq
    k = lax.dot_general(x2, wk, dn, preferred_element_type=jnp.float32) + bk

    # Back to per-batch layout; matmul operands in input dtype for full MXU rate.
    q3 = q.astype(x.dtype).reshape(bt, s, hp)
    k3 = k.astype(x.dtype).reshape(bt, s, hp)

    # Scaled scores; K consumed untransposed (contraction over the last dim).
    scores = jnp.einsum(
        "bqd,bkd->bqk", q3, k3, preferred_element_type=jnp.float32
    ) * scale

    # Numerically-stable softmax in f32; reciprocal on the EUP.
    m = jnp.max(scores, axis=-1, keepdims=True)
    e = jnp.exp(scores - m)
    denom = jnp.sum(e, axis=-1, keepdims=True)
    attn = (e * pl.reciprocal(denom, approx=True)).astype(x.dtype)

    # Weighted sum of the *input* (matches the reference: attn @ x).
    out = jnp.einsum("bqk,bkh->bqh", attn, x, preferred_element_type=jnp.float32)
    o_ref[...] = out.astype(o_ref.dtype)


def _largest_divisor_not_exceeding(n, cap):
    d = max(1, min(n, cap))
    while n % d:
        d -= 1
    return d


def _step_vmem_bytes(bt, s, hp, itemsize):
    io = 2 * (2 * bt * s * hp * itemsize)                 # double-buffered x-in / out
    weights = 2 * (hp * hp * itemsize + hp * itemsize)    # Wq/bq + Wk/bk
    scratch = 2 * bt * s * hp * 4                         # q, k (f32 accum)
    scratch += 2 * bt * s * s * 4                         # scores + exp (f32)
    scratch += bt * s * hp * 4                            # output accum (f32)
    return io + weights + scratch


def self_attention(x, wq, bq, wk, bk):
    """x: (B, S, H); wq/wk: (H, H) [out, in]; bq/bk: (H,) -> (B, S, H)."""
    B, S, H = x.shape
    out_dtype = x.dtype

    # Lane-dense padding of the hidden dim to a multiple of 128.  Zero-padded
    # input columns / weight rows+cols / bias entries leave Q@K^T, the softmax
    # and the first H output columns unchanged.
    Hp = max(128, ((H + 127) // 128) * 128)
    pad = Hp - H
    if pad:
        x = jnp.pad(x, ((0, 0), (0, 0), (0, pad)))
        wq = jnp.pad(wq, ((0, pad), (0, pad)))
        wk = jnp.pad(wk, ((0, pad), (0, pad)))
        bq = jnp.pad(bq, ((0, pad),))
        bk = jnp.pad(bk, ((0, pad),))
    bq2 = bq.reshape(1, Hp)
    bk2 = bk.reshape(1, Hp)

    itemsize = x.dtype.itemsize
    # Batch tile: as large as a conservative VMEM budget allows (so the Q/K
    # projections run as one wide (Bt*S, Hp) @ (Hp, Hp) MXU matmul per step)...
    budget = 8 * 1024 * 1024   # stays under the smallest scoped default (v5e: 16 MiB)
    bt = B
    while bt > 1 and _step_vmem_bytes(bt, S, Hp, itemsize) > budget:
        bt = _largest_divisor_not_exceeding(B, bt - 1)
    # ...but keep >=2 parallel grid steps when the batch allows it, so both v7x
    # TensorCores get work (no effect on single-TC v5e/v6e).
    if B > 1 and B // bt < 2:
        bt = _largest_divisor_not_exceeding(B, max(1, bt // 2))

    grid = (B // bt,)
    vmem_limit = int(min(64 * 1024 * 1024,
                         max(16 * 1024 * 1024,
                             2 * _step_vmem_bytes(bt, S, Hp, itemsize))))

    cost = pl.CostEstimate(
        flops=2 * B * (2 * S * Hp * Hp + 2 * S * S * Hp),
        transcendentals=B * S * S + B * S,
        bytes_accessed=2 * B * S * Hp * itemsize + 2 * (Hp * Hp + Hp) * itemsize,
    )

    kernel = functools.partial(_self_attention_kernel,
                               scale=float(1.0 / math.sqrt(H)))

    out = pl.pallas_call(
        kernel,
        out_shape=jax.ShapeDtypeStruct((B, S, Hp), out_dtype),
        grid_spec=pltpu.PrefetchScalarGridSpec(
            num_scalar_prefetch=0,
            grid=grid,
            in_specs=[
                pl.BlockSpec((bt, S, Hp), lambda b: (b, 0, 0)),   # x
                pl.BlockSpec((Hp, Hp), lambda b: (0, 0)),          # Wq
                pl.BlockSpec((1, Hp), lambda b: (0, 0)),           # bq
                pl.BlockSpec((Hp, Hp), lambda b: (0, 0)),          # Wk
                pl.BlockSpec((1, Hp), lambda b: (0, 0)),           # bk
            ],
            out_specs=pl.BlockSpec((bt, S, Hp), lambda b: (b, 0, 0)),
        ),
        compiler_params=pltpu.CompilerParams(
            dimension_semantics=("parallel",),
            vmem_limit_bytes=vmem_limit,
        ),
        cost_estimate=cost,
    )(x, wq, bq2, wk, bk2)

    if pad:
        out = out[..., :H]
    return out


def self_attention_ref(x, wq, bq, wk, bk):
    """Pure-JAX reference matching the PyTorch forward."""
    H = x.shape[-1]
    q = jnp.einsum("bsh,oh->bso", x, wq) + bq
    k = jnp.einsum("bsh,oh->bso", x, wk) + bk
    scores = jnp.einsum("bqh,bkh->bqk", q, k) / jnp.sqrt(jnp.float32(H))
    attn = jax.nn.softmax(scores, axis=-1)
    return jnp.einsum("bqk,bkh->bqh", attn, x)


if __name__ == "__main__":
    B, S, H = 2, 8, 32  # batch, seq_len, hidden_size

    key = jax.random.PRNGKey(0)
    kx, kwq, kbq, kwk, kbk = jax.random.split(key, 5)

    x = jax.random.normal(kx, (B, S, H), dtype=jnp.float32)

    # Deterministic "Linear" parameter init (PyTorch-like uniform bound).
    bound = 1.0 / math.sqrt(H)
    wq = jax.random.uniform(kwq, (H, H), jnp.float32, -bound, bound)
    bq = jax.random.uniform(kbq, (H,), jnp.float32, -bound, bound)
    wk = jax.random.uniform(kwk, (H, H), jnp.float32, -bound, bound)
    bk = jax.random.uniform(kbk, (H,), jnp.float32, -bound, bound)

    out = self_attention(x, wq, bq, wk, bk)
    out = jax.block_until_ready(out)

    ref = self_attention_ref(x, wq, bq, wk, bk)
    assert out.shape == (B, S, H)
    # Tolerance accounts for the EUP approximate reciprocal in the softmax.
    assert jnp.allclose(out, ref, atol=2e-3, rtol=2e-3), (
        "mismatch vs reference, max abs diff = %e" % float(jnp.max(jnp.abs(out - ref)))
    )

    print("KERNEL_OK")
</pallas_src>

<mosaic_0001>
module attributes {stable_mosaic.version = 11 : i64} {
  func.func @_self_attention_kernel(%arg0: i32, %arg1: memref<1x8x128xf32, #tpu.memory_space<vmem>>, %arg2: memref<128x128xf32, #tpu.memory_space<vmem>>, %arg3: memref<1x128xf32, #tpu.memory_space<vmem>>, %arg4: memref<128x128xf32, #tpu.memory_space<vmem>>, %arg5: memref<1x128xf32, #tpu.memory_space<vmem>>, %arg6: memref<1x8x128xf32, #tpu.memory_space<vmem>>) attributes {dimension_semantics = [#tpu.dimension_semantics<parallel>], iteration_bounds = array<i64: 2>, scalar_prefetch = 0 : i64, scratch_operands = 0 : i64, tpu.core_type = #tpu.core_type<tc>, window_params = [{transform_indices = @transform_0, window_bounds = array<i64: 1, 8, 128>}, {pipeline_mode = #tpu.pipeline_mode<synchronous>, transform_indices = @transform_1, window_bounds = array<i64: 128, 128>}, {pipeline_mode = #tpu.pipeline_mode<synchronous>, transform_indices = @transform_2, window_bounds = array<i64: 1, 128>}, {pipeline_mode = #tpu.pipeline_mode<synchronous>, transform_indices = @transform_3, window_bounds = array<i64: 128, 128>}, {pipeline_mode = #tpu.pipeline_mode<synchronous>, transform_indices = @transform_4, window_bounds = array<i64: 1, 128>}, {transform_indices = @transform_5, window_bounds = array<i64: 1, 8, 128>}]} {
    %c0 = arith.constant 0 : index
    %c0_0 = arith.constant 0 : index
    %c0_1 = arith.constant 0 : index
    %0 = vector.load %arg1[%c0, %c0_0, %c0_1] : memref<1x8x128xf32, #tpu.memory_space<vmem>>, vector<1x8x128xf32>
    %1 = vector.shape_cast %0 : vector<1x8x128xf32> to vector<8x128xf32>
    %c0_2 = arith.constant 0 : index
    %c0_3 = arith.constant 0 : index
    %2 = vector.load %arg2[%c0_2, %c0_3] : memref<128x128xf32, #tpu.memory_space<vmem>>, vector<128x128xf32>
    %c0_4 = arith.constant 0 : index
    %c0_5 = arith.constant 0 : index
    %3 = vector.load %arg4[%c0_4, %c0_5] : memref<128x128xf32, #tpu.memory_space<vmem>>, vector<128x128xf32>
    %c0_6 = arith.constant 0 : index
    %c0_7 = arith.constant 0 : index
    %4 = vector.load %arg3[%c0_6, %c0_7] : memref<1x128xf32, #tpu.memory_space<vmem>>, vector<1x128xf32>
    %c0_8 = arith.constant 0 : index
    %c0_9 = arith.constant 0 : index
    %5 = vector.load %arg5[%c0_8, %c0_9] : memref<1x128xf32, #tpu.memory_space<vmem>>, vector<1x128xf32>
    %cst = arith.constant dense<0.000000e+00> : vector<8x128xf32>
    %6 = tpu.matmul %1, %2, %cst {dimension_numbers = #tpu.dot_dimension_numbers<[1], [1], [0], [0], [0, 0, 1, 0], [], []>} : vector<8x128xf32>, vector<128x128xf32>, vector<8x128xf32> -> vector<8x128xf32>
    %7 = vector.broadcast %4 : vector<1x128xf32> to vector<8x128xf32>
    %8 = arith.addf %6, %7 : vector<8x128xf32>
    %cst_10 = arith.constant dense<0.000000e+00> : vector<8x128xf32>
    %9 = tpu.matmul %1, %3, %cst_10 {dimension_numbers = #tpu.dot_dimension_numbers<[1], [1], [0], [0], [0, 0, 1, 0], [], []>} : vector<8x128xf32>, vector<128x128xf32>, vector<8x128xf32> -> vector<8x128xf32>
    %10 = vector.broadcast %5 : vector<1x128xf32> to vector<8x128xf32>
    %11 = arith.addf %9, %10 : vector<8x128xf32>
    %12 = vector.shape_cast %8 : vector<8x128xf32> to vector<1x8x128xf32>
    %13 = vector.shape_cast %11 : vector<8x128xf32> to vector<1x8x128xf32>
    "tpu.trace_start"() <{level = 10 : i32, message = "bqd,bkd->bqk"}> : () -> ()
    %cst_11 = arith.constant dense<0.000000e+00> : vector<1x8x8xf32>
    %14 = tpu.matmul %12, %13, %cst_11 {dimension_numbers = #tpu.dot_dimension_numbers<[2], [2], [1], [1], [0, 0, 0, 1, 1, 1], [0], [0]>} : vector<1x8x128xf32>, vector<1x8x128xf32>, vector<1x8x8xf32> -> vector<1x8x8xf32>
    "tpu.trace_stop"() : () -> ()
    %cst_12 = arith.constant 0.176776692 : f32
    %15 = vector.broadcast %cst_12 : f32 to vector<1x8x8xf32>
    %16 = arith.mulf %14, %15 : vector<1x8x8xf32>
    %cst_13 = arith.constant dense<0xFF800000> : vector<1x8xf32>
    %17 = vector.multi_reduction <maximumf>, %16, %cst_13 [2] : vector<1x8x8xf32> to vector<1x8xf32>
    %18 = vector.shape_cast %17 : vector<1x8xf32> to vector<1x8x1xf32>
    %19 = vector.broadcast %18 : vector<1x8x1xf32> to vector<1x8x8xf32>
    %20 = arith.subf %16, %19 : vector<1x8x8xf32>
    %21 = math.exp %20 : vector<1x8x8xf32>
    %cst_14 = arith.constant dense<0.000000e+00> : vector<1x8xf32>
    %22 = vector.multi_reduction <add>, %21, %cst_14 [2] : vector<1x8x8xf32> to vector<1x8xf32>
    %23 = vector.shape_cast %22 : vector<1x8xf32> to vector<1x8x1xf32>
    %24 = tpu.reciprocal %23 {approx = true} : vector<1x8x1xf32> -> vector<1x8x1xf32>
    %25 = vector.broadcast %24 : vector<1x8x1xf32> to vector<1x8x8xf32>
    %26 = arith.mulf %21, %25 : vector<1x8x8xf32>
    "tpu.trace_start"() <{level = 10 : i32, message = "bqk,bkh->bqh"}> : () -> ()
    %cst_15 = arith.constant dense<0.000000e+00> : vector<1x8x128xf32>
    %27 = tpu.matmul %26, %0, %cst_15 {dimension_numbers = #tpu.dot_dimension_numbers<[2], [1], [1], [2], [0, 0, 0, 1, 1, 2], [0], [0]>} : vector<1x8x8xf32>, vector<1x8x128xf32>, vector<1x8x128xf32> -> vector<1x8x128xf32>
    "tpu.trace_stop"() : () -> ()
    %c0_16 = arith.constant 0 : index
    %c0_17 = arith.constant 0 : index
    %c0_18 = arith.constant 0 : index
    %28 = vector.load %arg6[%c0_16, %c0_17, %c0_18] : memref<1x8x128xf32, #tpu.memory_space<vmem>>, vector<1x8x128xf32>
    tpu.vector_store %arg6[%c0_16, %c0_17, %c0_18], %27 {strides = array<i32>} : memref<1x8x128xf32, #tpu.memory_space<vmem>>, vector<1x8x128xf32>,
    return
  }
  func.func @transform_0(%arg0: i32) -> (i32, i32, i32) {
    %c0_i32 = arith.constant 0 : i32
    %c0_i32_0 = arith.constant 0 : i32
    %c0_i32_1 = arith.constant 0 : i32
    return %arg0, %c0_i32, %c0_i32_0 : i32, i32, i32
  }
  func.func @transform_1(%arg0: i32) -> (i32, i32) {
    %c0_i32 = arith.constant 0 : i32
    %c0_i32_0 = arith.constant 0 : i32
    %c0_i32_1 = arith.constant 0 : i32
    return %c0_i32, %c0_i32_0 : i32, i32
  }
  func.func @transform_2(%arg0: i32) -> (i32, i32) {
    %c0_i32 = arith.constant 0 : i32
    %c0_i32_0 = arith.constant 0 : i32
    %c0_i32_1 = arith.constant 0 : i32
    return %c0_i32, %c0_i32_0 : i32, i32
  }
  func.func @transform_3(%arg0: i32) -> (i32, i32) {
    %c0_i32 = arith.constant 0 : i32
    %c0_i32_0 = arith.constant 0 : i32
    %c0_i32_1 = arith.constant 0 : i32
    return %c0_i32, %c0_i32_0 : i32, i32
  }
  func.func @transform_4(%arg0: i32) -> (i32, i32) {
    %c0_i32 = arith.constant 0 : i32
    %c0_i32_0 = arith.constant 0 : i32
    %c0_i32_1 = arith.constant 0 : i32
    return %c0_i32, %c0_i32_0 : i32, i32
  }
  func.func @transform_5(%arg0: i32) -> (i32, i32, i32) {
    %c0_i32 = arith.constant 0 : i32
    %c0_i32_0 = arith.constant 0 : i32
    %c0_i32_1 = arith.constant 0 : i32
    return %arg0, %c0_i32, %c0_i32_0 : i32, i32, i32
  }
}

</mosaic_0001>

<bundles_post_ra>
// kernel: tpu_custom_call.1
= control target key start
LH: loop header
LB: loop body
LE: loop exit
PB: predicated region body
PF: predicated region fallthrough
CT: control target
= control target key end

     0   :  { %10 = vsyncpa [#allocation3], 0  ;;  %s1351_s0 = inlined_call_operand.hbm [shape: f32[2,8,128], index: 0, kind: input, shape index: {}]   ;;  %s1352_s1 = inlined_call_operand.hbm [shape: f32[128,128], index: 1, kind: input, shape index: {}]   ;;  %s1353_s2 = inlined_call_operand.vmem [shape: f32[1,128], index: 2, kind: input, shape index: {}]   ;;  %s1354_s3 = inlined_call_operand.hbm [shape: f32[128,128], index: 3, kind: input, shape index: {}]   ;;  %s1355_s4 = inlined_call_operand.vmem [shape: f32[1,128], index: 4, kind: input, shape index: {}]   ;;  %s1356_s5 = inlined_call_operand.hbm [shape: f32[2,8,128], index: 5, kind: output, shape index: {}]  }
   0x1   :  { %12 = vsyncpa [#allocation3 + $0x1], 0 }
   0x2   :  { %13 = vsyncpa [#allocation6], 0 }
   0x3   :  { %14 = vsyncpa [#allocation4], 0 }
   0x4   :  { %16 = vsyncpa [#allocation4 + $0x1], 0  ;;  %s1116_s18 = smov 0   ;;  %s1118_s19 = smov 0  }
   0x5   :  { %s1120_s20 = smov 0   ;;  %s1122_s21 = smov 0  }
   0x6 LB: > { %s1137_s22 = sadd.s32 4294967295, %s1076_s21   ;;  %s716_s23 = sadd.s32 4294967294, %s1076_s21   ;;  %s1076_s21 = sphi %s1122_s21, %s1378_s21   ;;  %s1072_s20 = sphi %s1120_s20, %s1377_s20   ;;  %s1068_s19 = sphi %s1118_s19, %s1376_s19   ;;  %s1064_s18 = sphi %s1116_s18, %s1375_s18  }
   0x7   : > { %p42_p0 = scmp.ne.s32.totalorder %s1068_s19, %s1064_s18  ;;  %p1357_p1 = scmp.eq.s32.totalorder %s1137_s22, 0 }
   0x8   : > { %p156_p3 = scmp.eq.s32.totalorder %s716_s23, 1  ;;  %p717_p5 = scmp.ge.s32.totalorder %s1076_s21, 1 }
   0x9   : > { %p1146_p4 = por %p1357_p1, %p42_p0  ;;  %p163_p7 = scmp.lt.s32.totalorder %s1076_s21, 3 }
   0xa   : > { %p1151_p6 = por %p156_p3, %p42_p0  ;;  %s1078_s27 = smov [#allocation5]  }
   0xb   : > { %s1361_s24 = scalar_select %p1146_p4, 1, 0 }
   0xc   : > { %s1362_s25 = scalar_select %p1151_p6, 1, 0 }
   0xd   : > { %p1156_p8 = pnand %p717_p5, %p163_p7  ;;  %s175_s28 = sshll.u32 %s1078_s27, 4  ;;  %s176_s28 = int_to_ptr.vmem [resolvable:$true] %s175_s28 }
   0xe   : > { %s1079_s30 = smov [#allocation7]   ;;  %s939_s7 = scalar_lea.vmem %s176_s28, 2048 }
   0xf   : > { %s1363_s26 = scalar_select %p1156_p8, 1, 0 }
  0x10   : > { %p865_p9 = pneg %p1156_p8  ;;  %s191_s6 = sshll.u32 %s1079_s30, 4  ;;  %s192_s6 = int_to_ptr.vmem [resolvable:$true] %s191_s6 }
  0x11   : > { %p940_p13 = scmp.ne.s32.totalorder %s176_s28, %s939_s7  ;;  %p947_p5 = scmp.lt.s32.totalorder %s176_s28, %s176_s28 }
  0x12   : > { %p1165_p11 = pnand %p865_p9, %p1357_p1  ;;  %p948_p7 = scmp.lt.s32.totalorder %s939_s7, %s939_s7 }
  0x14   : > { %p930_p12 = pneg %p1165_p11  ;;  %p949_p10 = por %p948_p7, %p947_p5 }
  0x16   : > { %p942_p0 = pnand %p940_p13, %p930_p12 }
  0x18   : > { %p943_p3 = pneg %p942_p0 }
  0x1a   : > { %p950_p9 = pnand %p949_p10, %p943_p3 }
  0x1c   : > { %953 = shalt.err (!%p950_p9)
}
  0x1d   : > { %s1080_s8 = smov 128   ;;  %s1081_s9 = smov 8  }
  0x1e   : > { %868 = dma.hbm_to_vmem [thread:$0]  (!%p1165_p11), %s1352_s1, 2048, %s176_s28, [#allocation6], %s1080_s8, %s1080_s8, %s1081_s9  }
  0x1f   : > { %s965_s12 = scalar_lea.vmem %s192_s6, 2048  ;;  %p973_p2 = scmp.lt.s32.totalorder %s192_s6, %s192_s6 }
  0x20   : > { %p966_p1 = scmp.ne.s32.totalorder %s192_s6, %s965_s12  ;;  %p974_p6 = scmp.lt.s32.totalorder %s965_s12, %s965_s12 }
  0x22   : > { %p968_p13 = pnand %p966_p1, %p930_p12  ;;  %p975_p5 = por %p974_p6, %p973_p2 }
  0x24   : > { %p969_p0 = pneg %p968_p13 }
  0x26   : > { %p976_p10 = pnand %p975_p5, %p969_p0 }
  0x28   : > { %979 = shalt.err (!%p976_p10)
}
  0x29   : > { %871 = dma.hbm_to_vmem [thread:$0]  (!%p1165_p11), %s1354_s3, 2048, %s192_s6, [#allocation6], %s1080_s8, %s1080_s8, %s1081_s9  }
  0x2a   : > { %s1188_s15 = sadd.s32 1, %s1076_s21   ;;  %s29_s16 = sadd.s32 1, %s1072_s20 }
  0x2b   : > { %s26_s17 = ssub.s32 %s1076_s21, %s1188_s15  ;;  %p36_p1 = scmp.ne.s32.totalorder %s1072_s20, %s1068_s19 }
  0x2c   : > { %p27_p2 = scmp.eq.s32.totalorder %s26_s17, 0  ;;  %p37_p6 = scmp.eq.s32.totalorder %s1076_s21, 0 }
  0x2d   : > { %p1365_p12 = scmp.eq.s32.totalorder %s1137_s22, 1  ;;  %p882_p7 = scmp.lt.s32.totalorder %s1076_s21, 2 }
  0x2e   : > { %s1204_s27 = scalar_select %p27_p2, %s1072_s20, %s29_s16  }
  0x2f   : > { %p1198_p3 = por %p1365_p12, %p36_p1  ;;  %p38_p9 = por %p37_p6, %p36_p1 }
  0x30   : > { %s208_s28 = sand.u32 1, %s1072_s20   ;;  %s722_s30 = sshll.u32 %s1076_s21, 7 }
  0x31   : > { %s1366_s23 = scalar_select %p1198_p3, 1, 0 }
  0x32   : > { %s721_s29 = sshll.u32 %s208_s28, 3  ;;  %s1211_s8 = scalar_lea.hbm %s1351_s0, %s722_s30 }
  0x33   : > { %s212_s9 = scalar_lea.vmem [#allocation2], %s721_s29  ;;  %p1213_p11 = pnand %p882_p7, %p38_p9 }
  0x34   : > { %s219_s10 = sshll.u32 %s212_s9, 4  ;;  %s209_s12 = scalar_lea.sflag [#allocation3], %s208_s28  ;;  %s220_s10 = int_to_ptr.vmem [resolvable:$true] %s219_s10 }
  0x35   : > { %s980_s13 = scalar_lea.hbm %s1211_s8, 128  ;;  %p982_p0 = pneg %p1213_p11 }
  0x36   : > { %p981_p13 = scmp.ne.s32.totalorder %s1211_s8, %s980_s13  ;;  %s985_s17 = scalar_lea.hbm %s1351_s0, 256 }
  0x37   : > { %p986_p1 = scmp.lt.s32.totalorder %s1211_s8, %s1351_s0  ;;  %p987_p2 = scmp.lt.s32.totalorder %s985_s17, %s980_s13 }
  0x38   : > { %p983_p5 = pnand %p982_p0, %p981_p13 }
  0x39   : > { %p988_p6 = por %p987_p2, %p986_p1 }
  0x3a   : > { %p984_p10 = pneg %p983_p5 }
  0x3c   : > { %p989_p12 = pnand %p988_p6, %p984_p10 }
  0x3e   : > { %992 = shalt.err (!%p989_p12)
}
  0x3f   : > { %s993_s6 = scalar_lea.vmem %s220_s10, 128  ;;  %s1082_s28 = smov [#allocation2]  }
  0x40   : > { %p994_p7 = scmp.ne.s32.totalorder %s220_s10, %s993_s6  ;;  %s998_s7 = sshll.u32 %s1082_s28, 4  ;;  %s999_s7 = int_to_ptr.vmem [resolvable:$false] %s998_s7 }
  0x41   : > { %s1000_s9 = scalar_lea.vmem %s999_s7, 256  ;;  %p1001_p13 = scmp.lt.s32.totalorder %s220_s10, %s999_s7 }
  0x42   : > { %p996_p9 = pnand %p994_p7, %p982_p0  ;;  %p1002_p5 = scmp.lt.s32.totalorder %s1000_s9, %s993_s6 }
  0x44   : > { %p997_p3 = pneg %p996_p9  ;;  %p1003_p4 = por %p1002_p5, %p1001_p13 }
  0x46   : > { %p1004_p8 = pnand %p1003_p4, %p997_p3 }
  0x48   : > { %1007 = shalt.err (!%p1004_p8)
}
  0x49   : > { %875 = dma.hbm_to_vmem [thread:$0]  (!%p1213_p11), %s1211_s8, 128, %s220_s10, %s209_s12  }
  0x4a   : > { %p1368_p10 = scmp.ne.s32.totalorder %s1363_s26, 0 }
  0x4b   : > { %s1234_s13 = sand.u32 (!%p1368_p10), 1, %s1068_s19   ;;  %p1369_p4 = scmp.ne.s32.totalorder (!%p1368_p10), %s1361_s24, 0 }
  0x4c   : > { %228 = sbr.rel (%p1368_p10) target bundleno = 1063 (0x427), region = 40  ;;  %s724_s14 = sshll.u32 (!%p1368_p10), %s1234_s13, 3 }
  0x4d   : > { %s231_s16 = scalar_lea.sflag (!%p1368_p10), [#allocation3], %s1234_s13  ;;  %s1240_s17 = scalar_lea.vmem (!%p1368_p10), [#allocation2], %s724_s14 }
  0x51   : > { %1051 = dma.done.wait (%p1369_p4), %s231_s16, 128  }
  0x52   : > { %1053 = vsyncadd (%p1369_p4), %s231_s16, 4294967168  ;;  %p1370_p8 = scmp.eq.s32.totalorder %s1137_s22, 0 }
  0x54   : > { %1055 = dma.done.wait (%p1370_p8), [#allocation6], 4096   ;;  %p1371_p3 = pmov %p1370_p8 }
  0x55   : > { %v1083_v0 = vmov 0.0   ;;  %vm1084_vm0 = vmmov 0   ;;  %v301_v1 = vld [vmem:[#allocation7 + $0x78] sm:$0xff]  ;;  %v300_v3 = vld [vmem:[#allocation7 + $0x70] sm:$0xff]  ;;  %v299_v5 = vld [vmem:[#allocation7 + $0x68] sm:$0xff]  ;;  %vm527_vm1 = vcmask 64512  }
  0x56   : > { %1057 = vsyncadd (%p1371_p3), [#allocation6], 4294963200  ;;  %808 = vmatprep.subr.mxu1 %v1083_v0  ;;  %773 = vmatprep.subr.mxu0 %v1083_v0  ;;  %v285_v2 = vld [vmem:[#allocation5 + $0x78] sm:$0xff]  ;;  %v284_v4 = vld [vmem:[#allocation5 + $0x70] sm:$0xff]  ;;  %s268_s11 = scalar_lea.vmem [#allocation8], %s724_s14  ;;  %s732_s30 = sshll.u32 %s1137_s22, 7 }
  0x57   : > { %840 = vmatprep.mubr.msk.f32.mxu1 %vm1084_vm0, %v1083_v0  ;;  %805 = vmatprep.mubr.msk.f32.mxu0 %vm1084_vm0, %v1083_v0  ;;  %v283_v6 = vld [vmem:[#allocation5 + $0x68] sm:$0xff]  ;;  %v298_v7 = vld [vmem:[#allocation7 + $0x60] sm:$0xff]  ;;  %v297_v9 = vld [vmem:[#allocation7 + $0x58] sm:$0xff]  ;;  %s627_s12 = sshll.u32 %s268_s11, 4  ;;  %s1310_s28 = scalar_lea.hbm %s1356_s5, %s732_s30  ;;  %s1305_s12 = int_to_ptr.vmem [resolvable:$true] %s627_s12 }
  0x58   : > { %809 = vmatpush3.xpose.msra.mxu1 %v301_v1  ;;  %774 = vmatpush3.xpose.msra.mxu0 %v285_v2  ;;  %v282_v8 = vld [vmem:[#allocation5 + $0x60] sm:$0xff]  ;;  %v281_v10 = vld [vmem:[#allocation5 + $0x58] sm:$0xff]  ;;  %v296_v11 = vld [vmem:[#allocation7 + $0x50] sm:$0xff]  ;;  %s614_s7 = scalar_lea.sflag [#allocation4], %s1234_s13  ;;  %s1008_s9 = scalar_lea.vmem %s1305_s12, 128 }
  0x59   : > { %810 = vmatprep.subr.mxu1 %v1083_v0  ;;  %775 = vmatprep.subr.mxu0 %v1083_v0  ;;  %v280_v12 = vld [vmem:[#allocation5 + $0x50] sm:$0xff]  ;;  %v295_v13 = vld [vmem:[#allocation7 + $0x48] sm:$0xff]  ;;  %v294_v15 = vld [vmem:[#allocation7 + $0x40] sm:$0xff]  ;;  %p1009_p11 = scmp.ne.s32.totalorder %s1305_s12, %s1008_s9  ;;  %p1372_p0 = scmp.ne.s32.totalorder %s1366_s23, 0 }
  0x5a   : > { %v279_v14 = vld [vmem:[#allocation5 + $0x48] sm:$0xff]  ;;  %v278_v16 = vld [vmem:[#allocation5 + $0x40] sm:$0xff]  ;;  %v293_v17 = vld [vmem:[#allocation7 + $0x38] sm:$0xff]  ;;  %s1085_s22 = smov [#allocation8]  }
  0x5b   : > { %v277_v18 = vld [vmem:[#allocation5 + $0x38] sm:$0xff]  ;;  %v292_v19 = vld [vmem:[#allocation7 + $0x30] sm:$0xff]  ;;  %v291_v21 = vld [vmem:[#allocation7 + $0x28] sm:$0xff]  ;;  %p1010_p1 = pnand %p1009_p11, %p1372_p0  ;;  %s1012_s14 = sshll.u32 %s1085_s22, 4  ;;  %s1013_s14 = int_to_ptr.vmem [resolvable:$false] %s1012_s14 }
  0x5c   : > { %811 = vmatpush3.xpose.msra.mxu1 %v300_v3  ;;  %776 = vmatpush3.xpose.msra.mxu0 %v284_v4  ;;  %v276_v20 = vld [vmem:[#allocation5 + $0x30] sm:$0xff]  ;;  %v275_v22 = vld [vmem:[#allocation5 + $0x28] sm:$0xff]  ;;  %v290_v23 = vld [vmem:[#allocation7 + $0x20] sm:$0xff]  ;;  %s1014_s16 = scalar_lea.vmem %s1013_s14, 256  ;;  %p1015_p6 = scmp.lt.s32.totalorder %s1305_s12, %s1013_s14 }
  0x5d   : > { %812 = vmatprep.subr.mxu1 %v1083_v0  ;;  %777 = vmatprep.subr.mxu0 %v1083_v0  ;;  %v274_v24 = vld [vmem:[#allocation5 + $0x20] sm:$0xff]  ;;  %v289_v25 = vld [vmem:[#allocation7 + $0x18] sm:$0xff]  ;;  %v288_v27 = vld [vmem:[#allocation7 + $0x10] sm:$0xff]  ;;  %p1011_p2 = pneg %p1010_p1  ;;  %p1016_p12 = scmp.lt.s32.totalorder %s1014_s16, %s1008_s9 }
  0x5e   : > { %v273_v26 = vld [vmem:[#allocation5 + $0x18] sm:$0xff]  ;;  %v272_v28 = vld [vmem:[#allocation5 + $0x10] sm:$0xff]  ;;  %v287_v29 = vld [vmem:[#allocation7 + $0x8] sm:$0xff] }
  0x5f   : > { %v271_v30 = vld [vmem:[#allocation5 + $0x8] sm:$0xff]  ;;  %v286_v31 = vld [vmem:[#allocation7] sm:$0xff]  ;;  %v269_v33 = vld [vmem:[%s1240_s17] sm:$0xff]  ;;  %p1017_p7 = por %p1016_p12, %p1015_p6 }
  0x60   : > { %813 = vmatpush3.xpose.msra.mxu1 %v299_v5  ;;  %778 = vmatpush3.xpose.msra.mxu0 %v283_v6  ;;  %v270_v32 = vld [vmem:[#allocation5] sm:$0xff]  ;;  %v729_v34 = vld [vmem:[%s1355_s4] ss:$0 sm:$0xff] }
  0x61   : > { %814 = vmatprep.subr.mxu1 %v1083_v0  ;;  %779 = vmatprep.subr.mxu0 %v1083_v0  ;;  %v728_v35 = vld [vmem:[%s1353_s2] ss:$0 sm:$0xff]  ;;  %p1018_p9 = pnand %p1017_p7, %p1011_p2 }
  0x64   : > { %815 = vmatpush3.xpose.msra.mxu1 %v298_v7  ;;  %780 = vmatpush3.xpose.msra.mxu0 %v282_v8 }
  0x65   : > { %816 = vmatprep.subr.mxu1 %v1083_v0  ;;  %781 = vmatprep.subr.mxu0 %v1083_v0 }
  0x68   : > { %817 = vmatpush3.xpose.msra.mxu1 %v297_v9  ;;  %782 = vmatpush3.xpose.msra.mxu0 %v281_v10 }
  0x69   : > { %818 = vmatprep.subr.mxu1 %v1083_v0  ;;  %783 = vmatprep.subr.mxu0 %v1083_v0 }
  0x6c   : > { %819 = vmatpush3.xpose.msra.mxu1 %v296_v11  ;;  %784 = vmatpush3.xpose.msra.mxu0 %v280_v12 }
  0x6d   : > { %820 = vmatprep.subr.mxu1 %v1083_v0  ;;  %785 = vmatprep.subr.mxu0 %v1083_v0 }
  0x70   : > { %821 = vmatpush3.xpose.msra.mxu1 %v295_v13  ;;  %786 = vmatpush3.xpose.msra.mxu0 %v279_v14 }
  0x71   : > { %822 = vmatprep.subr.mxu1 %v1083_v0  ;;  %787 = vmatprep.subr.mxu0 %v1083_v0 }
  0x74   : > { %823 = vmatpush3.xpose.msra.mxu1 %v294_v15  ;;  %788 = vmatpush3.xpose.msra.mxu0 %v278_v16 }
  0x75   : > { %824 = vmatprep.subr.mxu1 %v1083_v0  ;;  %789 = vmatprep.subr.mxu0 %v1083_v0 }
  0x78   : > { %825 = vmatpush3.xpose.msra.mxu1 %v293_v17  ;;  %790 = vmatpush3.xpose.msra.mxu0 %v277_v18 }
  0x79   : > { %826 = vmatprep.subr.mxu1 %v1083_v0  ;;  %791 = vmatprep.subr.mxu0 %v1083_v0 }
  0x7c   : > { %827 = vmatpush3.xpose.msra.mxu1 %v292_v19  ;;  %792 = vmatpush3.xpose.msra.mxu0 %v276_v20 }
  0x7d   : > { %828 = vmatprep.subr.mxu1 %v1083_v0  ;;  %793 = vmatprep.subr.mxu0 %v1083_v0 }
  0x80   : > { %829 = vmatpush3.xpose.msra.mxu1 %v291_v21  ;;  %794 = vmatpush3.xpose.msra.mxu0 %v275_v22 }
  0x81   : > { %830 = vmatprep.subr.mxu1 %v1083_v0  ;;  %795 = vmatprep.subr.mxu0 %v1083_v0 }
  0x84   : > { %831 = vmatpush3.xpose.msra.mxu1 %v290_v23  ;;  %796 = vmatpush3.xpose.msra.mxu0 %v274_v24 }
  0x85   : > { %832 = vmatprep.subr.mxu1 %v1083_v0  ;;  %797 = vmatprep.subr.mxu0 %v1083_v0 }
  0x88   : > { %833 = vmatpush3.xpose.msra.mxu1 %v289_v25  ;;  %798 = vmatpush3.xpose.msra.mxu0 %v273_v26 }
  0x89   : > { %834 = vmatprep.subr.mxu1 %v1083_v0  ;;  %799 = vmatprep.subr.mxu0 %v1083_v0 }
  0x8c   : > { %835 = vmatpush3.xpose.msra.mxu1 %v288_v27  ;;  %800 = vmatpush3.xpose.msra.mxu0 %v272_v28 }
  0x8d   : > { %836 = vmatprep.subr.mxu1 %v1083_v0  ;;  %801 = vmatprep.subr.mxu0 %v1083_v0 }
  0x90   : > { %837 = vmatpush3.xpose.msra.mxu1 %v287_v29  ;;  %802 = vmatpush3.xpose.msra.mxu0 %v271_v30 }
  0x91   : > { %838 = vmatprep.subr.mxu1 %v1083_v0  ;;  %803 = vmatprep.subr.mxu0 %v1083_v0 }
  0x94   : > { %839 = vmatpush3.xpose.msra.mxu1 %v286_v31  ;;  %804 = vmatpush3.xpose.msra.mxu0 %v270_v32 }
  0x95   : > { %843 = vmatprep.subr.mxu0 %v1083_v0  ;;  %848 = vmatprep.subr.mxu1 %v1083_v0 }
  0x97   : > { %841 = vmatmul.mubr.f32.vlgmr.msra.gmra.mxu1 %v269_v33  ;;  %806 = vmatmul.mubr.f32.vlgmr.msra.gmra.mxu0 %v269_v33 }
  0x98   : > { %845 = vmatprep.mubr.msk.f32.mxu0 %vm1084_vm0, %v1083_v0  ;;  %849 = vmatpush3.msra.mxu1 %v269_v33 }
  0x99   : > { %850 = vmatprep.mubr.msk.f32.mxu1 %vm1084_vm0, %v1083_v0 }
 0x157   : > { %v452_v36 = vpop.f32.mrf.mxu1  ;;  %v376_v37 = vpop.f32.mrf.mxu0 }
 0x158   : > { %v453_v38 = vadd.f32 %v729_v34, %v452_v36  ;;  %v377_v39 = vadd.f32 %v728_v35, %v376_v37 }
 0x159   : > { %v842_v40 = vpop.f32.mrf.mxu1  ;;  %v807_v41 = vpop.f32.mrf.mxu0 }
 0x15a   : > { %844 = vmatpush3.xpose.msra.mxu0 %v453_v38 }
 0x15d   : > { %846 = vmatmul.mubr.f32.vlgmr.msra.gmra.mxu0 %v377_v39 }
 0x21d   : > { %v522_v42 = vpop.f32.mrf.mxu0 }
 0x21e   : > { %v526_v43 = vmul.f32 0.17677669, %v522_v42 }
 0x21f   : > { %v847_v44 = vpop.f32.mrf.mxu0 }
 0x220   : > { %v528_v45 = vsel %vm527_vm1, %v526_v43, -inf }
 0x221   : > { %529 = vmax.xlane.f32.xlu0 %v528_v45 }
 0x2aa   : > { %v530_v46 = vpop.xlane.xlu0 %529 }
 0x2ab   : > { %v531_v47 = vsub.f32 %v526_v43, %v530_v46 }
 0x2ad   : > { %v532_v48 = vmul.f32 1.442695, %v531_v47 }
 0x2af   : > { %924 = vpow2.f32 %v532_v48 }
 0x2bc   : > { %v925_v49 = vpop.eup %924 }
 0x2bd   : > { %v534_v50 = vsel %vm527_vm1, %v925_v49, 0.0 }
 0x2be   : > { %535 = vadd.xlane.f32.xlu0 %v534_v50 }
 0x347   : > { %v536_v51 = vpop.xlane.xlu0 %535 }
 0x348   : > { %926 = vrcp.f32 %v536_v51 }
 0x355   : > { %v927_v52 = vpop.eup %926 }
 0x356   : > { %v538_v53 = vmul.f32 %v927_v52, %v925_v49 }
 0x358   : > { %851 = vmatmul.mubr.msk.f32.vlgmr.msra.gmra.mxu1 %vm527_vm1, %v538_v53 }
 0x418   : > { %v608_v54 = vpop.f32.mrf.mxu1 }
 0x419   : > { %612 = vst [vmem:[%s268_s11] sm:$0xff] %v608_v54 }
 0x41a   : > { %v852_v55 = vpop.f32.mrf.mxu1 }
 0x41b   : > { %1021 = shalt.err (!%p1018_p9)
}
 0x41c   : > { %s1022_s17 = scalar_lea.hbm %s1310_s28, 128  ;;  %s1026_s26 = scalar_lea.hbm %s1356_s5, 256 }
 0x41d   : > { %p1023_p13 = scmp.ne.s32.totalorder %s1310_s28, %s1022_s17  ;;  %p1027_p4 = scmp.lt.s32.totalorder %s1310_s28, %s1356_s5 }
 0x41e   : > { %p1028_p8 = scmp.lt.s32.totalorder %s1026_s26, %s1022_s17 }
 0x41f   : > { %p1024_p5 = pnand %p1023_p13, %p1372_p0 }
 0x420   : > { %p1029_p3 = por %p1028_p8, %p1027_p4 }
 0x421   : > { %p1025_p10 = pneg %p1024_p5 }
 0x423   : > { %p1030_p11 = pnand %p1029_p3, %p1025_p10 }
 0x425   : > { %1033 = shalt.err (!%p1030_p11)
}
 0x426   : > { %863 = dma.vmem_to_hbm [thread:$0]  (%p1372_p0), %s1305_s12, 128, %s1310_s28, %s614_s7  }
 0x427 PF: > { %s639_s11 = sand.u32 1, %s1064_s18   ;;  %p1373_p1 = scmp.ne.s32.totalorder %s1362_s25, 0 }
 0x428   : > { %p1374_p2 = scmp.ge.s32.totalorder %s1076_s21, 2  ;;  %s640_s30 = scalar_lea.sflag [#allocation4], %s639_s11 }
 0x42a   : > { %p877_p6 = pnand %p1374_p2, %p1373_p1 }
 0x42c   : > { %p878_p12 = pneg %p877_p6 }
 0x42e   : > { %1059 = dma.done.wait (%p878_p12), %s640_s30, 128  }
 0x42f   : > { %1061 = vsyncadd (%p878_p12), %s640_s30, 4294967168  ;;  %p19_p7 = scmp.ge.s32.totalorder %s1188_s15, 4   ;;  %s1375_s18 = smov %s1068_s19 }
 0x430   : > { %s1376_s19 = smov %s1072_s20  ;;  %s1377_s20 = smov %s1204_s27 }
 0x431   : > { %s1378_s21 = smov %s1188_s15  ;;  %21 = sbr.rel (!%p19_p7) target bundleno = 6 (0x6), region = 93 }
 0x436   :  { %645 = vsyncpa [#allocation3], 1 }
 0x437   :  { %647 = vsyncpa [#allocation3 + $0x1], 1 }
 0x438   :  { %648 = vsyncpa [#allocation6], 1 }
 0x439   :  { %649 = vsyncpa [#allocation4], 1 }
 0x43a   :  { %651 = vsyncpa [#allocation4 + $0x1], 1 }

</bundles_post_ra>
